<compile_context>
chip_gen: v5e
topology: v5e:2x2
jax: 0.10.0
libtpu: 0.0.40
codegen_flags: <defaults>
</compile_context>

<pallas_src>
import jax
import jax.numpy as jnp
from jax.experimental import pallas as pl
from jax.experimental.pallas import tpu as pltpu

LANE = 128          # TPU lane width: pad hidden/output feature dims to this
TM_MAX = 2048       # max batch-tile rows (keeps double-buffered tiles << VMEM)


def _round_up(x, m):
    return ((x + m - 1) // m) * m


def acoustic_adapt_kernel(x_ref, wh_ref, bh_ref, wm_ref, bm_ref, wt_ref, bt_ref, o_ref):
    # source_model.hidden : bf16 x bf16 -> f32 accumulate, bias + tanh in f32
    h = jnp.tanh(
        jnp.dot(x_ref[...], wh_ref[...], preferred_element_type=jnp.float32)
        + bh_ref[...]
    )
    # source_model.mean Linear
    mean = (
        jnp.dot(h.astype(jnp.bfloat16), wm_ref[...], preferred_element_type=jnp.float32)
        + bm_ref[...]
    )
    # trans0 adaptation Linear
    o_ref[...] = (
        jnp.dot(mean.astype(jnp.bfloat16), wt_ref[...], preferred_element_type=jnp.float32)
        + bt_ref[...]
    )


def prepare_params(params):
    """One-time prep: zero-pad feature dims to 128 lanes, cast matmul weights to bf16."""
    n_input, n_hidden = params["wh_t"].shape
    n_output = params["wt_t"].shape[1]
    h_pad = _round_up(n_hidden, LANE)
    n_pad = _round_up(n_output, LANE)

    def pad2(a, rows, cols):
        return jnp.pad(a, ((0, rows - a.shape[0]), (0, cols - a.shape[1])))

    return {
        "n_input": n_input,
        "n_output": n_output,
        "h_pad": h_pad,
        "n_pad": n_pad,
        # matmul operands -> bf16 (halves HBM bytes, native MXU dtype)
        "wh_t": pad2(params["wh_t"], n_input, h_pad).astype(jnp.bfloat16),
        "wm_t": pad2(params["wm_t"], h_pad, n_pad).astype(jnp.bfloat16),
        "wt_t": pad2(params["wt_t"], n_pad, n_pad).astype(jnp.bfloat16),
        # biases stay f32 (added to the f32 accumulators)
        "bh": pad2(params["bh"], 1, h_pad).astype(jnp.float32),
        "bm": pad2(params["bm"], 1, n_pad).astype(jnp.float32),
        "bt": pad2(params["bt"], 1, n_pad).astype(jnp.float32),
    }


def acoustic_model_adapt(x, prep, tm=None):
    """Forward pass of AcousticModelAdapt: trans0(source_model(x))."""
    b, n_in = x.shape
    assert n_in == prep["n_input"]
    h_pad, n_pad, n_out = prep["h_pad"], prep["n_pad"], prep["n_output"]

    if tm is None:
        tm = min(TM_MAX, _round_up(b, 16))
    tm = _round_up(tm, 16)                      # bf16 sublane packing
    b_pad = _round_up(b, tm)
    grid = (pl.cdiv(b_pad, tm),)

    # Cast activations to bf16; zero-pad ragged batch rows (sliced off below).
    xb = x.astype(jnp.bfloat16)
    if b_pad != b:
        xb = jnp.pad(xb, ((0, b_pad - b), (0, 0)))

    vmem = pltpu.MemorySpace.VMEM
    flops = 2 * b_pad * (n_in * h_pad + h_pad * n_pad + n_pad * n_pad)
    bytes_accessed = (
        xb.size * 2                                               # x (bf16)
        + (prep["wh_t"].size + prep["wm_t"].size + prep["wt_t"].size) * 2
        + (prep["bh"].size + prep["bm"].size + prep["bt"].size) * 4
        + b_pad * n_pad * 4                                       # output (f32)
    )

    out_padded = pl.pallas_call(
        acoustic_adapt_kernel,
        out_shape=jax.ShapeDtypeStruct((b_pad, n_pad), jnp.float32),
        grid=grid,
        in_specs=[
            # streamed per batch tile
            pl.BlockSpec((tm, n_in), lambda i: (i, 0), memory_space=vmem),
            # weights / biases: constant index_map -> VMEM-resident across the grid
            pl.BlockSpec((n_in, h_pad), lambda i: (0, 0), memory_space=vmem),
            pl.BlockSpec((1, h_pad), lambda i: (0, 0), memory_space=vmem),
            pl.BlockSpec((h_pad, n_pad), lambda i: (0, 0), memory_space=vmem),
            pl.BlockSpec((1, n_pad), lambda i: (0, 0), memory_space=vmem),
            pl.BlockSpec((n_pad, n_pad), lambda i: (0, 0), memory_space=vmem),
            pl.BlockSpec((1, n_pad), lambda i: (0, 0), memory_space=vmem),
        ],
        out_specs=pl.BlockSpec((tm, n_pad), lambda i: (i, 0), memory_space=vmem),
        compiler_params=pltpu.CompilerParams(
            dimension_semantics=("parallel",),   # shards batch tiles across TCs on v7x
        ),
        cost_estimate=pl.CostEstimate(
            flops=flops,
            transcendentals=b_pad * h_pad,       # tanh
            bytes_accessed=bytes_accessed,
        ),
    )(
        xb,
        prep["wh_t"], prep["bh"],
        prep["wm_t"], prep["bm"],
        prep["wt_t"], prep["bt"],
    )
    # Strip batch + lane padding outside the kernel (lane-dense stores inside).
    return out_padded[:b, :n_out]


def init_params(key, n_input, n_hidden, n_output):
    ks = jax.random.split(key, 7)
    scale = 0.1
    return {
        # source_model.hidden : Linear(n_input, n_hidden)   (stored transposed)
        "wh_t": scale * jax.random.normal(ks[0], (n_input, n_hidden), jnp.float32),
        "bh":   scale * jax.random.normal(ks[1], (1, n_hidden), jnp.float32),
        # source_model.mean : Linear(n_hidden, n_output)    (stored transposed)
        "wm_t": scale * jax.random.normal(ks[2], (n_hidden, n_output), jnp.float32),
        "bm":   scale * jax.random.normal(ks[3], (1, n_output), jnp.float32),
        # trans0 : Linear(n_output, n_output)               (stored transposed)
        "wt_t": scale * jax.random.normal(ks[4], (n_output, n_output), jnp.float32),
        "bt":   scale * jax.random.normal(ks[5], (1, n_output), jnp.float32),
        # registered buffer `variance` (not used in forward, kept for parity)
        "variance": jnp.abs(scale * jax.random.normal(ks[6], (n_output,), jnp.float32)),
    }


def reference_forward(x, p):
    h = jnp.tanh(x @ p["wh_t"] + p["bh"])
    mean = h @ p["wm_t"] + p["bm"]
    return mean @ p["wt_t"] + p["bt"]


if __name__ == "__main__":
    # Small demo shapes; B not a multiple of the tile to exercise batch padding,
    # and a small explicit tile (tm=64) to exercise a multi-step grid.
    B, N_INPUT, N_HIDDEN, N_OUTPUT = 200, 32, 64, 32

    key = jax.random.PRNGKey(0)
    k_x, k_p = jax.random.split(key)
    x = jax.random.normal(k_x, (B, N_INPUT), jnp.float32)
    params = init_params(k_p, N_INPUT, N_HIDDEN, N_OUTPUT)

    prep = prepare_params(params)
    out = acoustic_model_adapt(x, prep, tm=64)
    out = jax.block_until_ready(out)

    ref = reference_forward(x, params)
    assert out.shape == (B, N_OUTPUT)
    # bf16 matmul operands -> slightly looser tolerance vs. the f32 reference
    assert jnp.allclose(out, ref, atol=5e-2, rtol=5e-2), float(jnp.max(jnp.abs(out - ref)))

    print("KERNEL_OK")
</pallas_src>

<mosaic_0001>
module attributes {stable_mosaic.version = 11 : i64} {
  func.func @acoustic_adapt_kernel(%arg0: i32, %arg1: memref<64x32xbf16, #tpu.memory_space<vmem>>, %arg2: memref<32x128xbf16, #tpu.memory_space<vmem>>, %arg3: memref<1x128xf32, #tpu.memory_space<vmem>>, %arg4: memref<128x128xbf16, #tpu.memory_space<vmem>>, %arg5: memref<1x128xf32, #tpu.memory_space<vmem>>, %arg6: memref<128x128xbf16, #tpu.memory_space<vmem>>, %arg7: memref<1x128xf32, #tpu.memory_space<vmem>>, %arg8: memref<64x128xf32, #tpu.memory_space<vmem>>) attributes {dimension_semantics = [#tpu.dimension_semantics<parallel>], iteration_bounds = array<i64: 4>, scalar_prefetch = 0 : i64, scratch_operands = 0 : i64, tpu.core_type = #tpu.core_type<tc>, window_params = [{transform_indices = @transform_0, window_bounds = array<i64: 64, 32>}, {pipeline_mode = #tpu.pipeline_mode<synchronous>, transform_indices = @transform_1, window_bounds = array<i64: 32, 128>}, {pipeline_mode = #tpu.pipeline_mode<synchronous>, transform_indices = @transform_2, window_bounds = array<i64: 1, 128>}, {pipeline_mode = #tpu.pipeline_mode<synchronous>, transform_indices = @transform_3, window_bounds = array<i64: 128, 128>}, {pipeline_mode = #tpu.pipeline_mode<synchronous>, transform_indices = @transform_4, window_bounds = array<i64: 1, 128>}, {pipeline_mode = #tpu.pipeline_mode<synchronous>, transform_indices = @transform_5, window_bounds = array<i64: 128, 128>}, {pipeline_mode = #tpu.pipeline_mode<synchronous>, transform_indices = @transform_6, window_bounds = array<i64: 1, 128>}, {transform_indices = @transform_7, window_bounds = array<i64: 64, 128>}]} {
    %c0 = arith.constant 0 : index
    %c0_0 = arith.constant 0 : index
    %0 = vector.load %arg1[%c0, %c0_0] : memref<64x32xbf16, #tpu.memory_space<vmem>>, vector<64x32xbf16>
    %c0_1 = arith.constant 0 : index
    %c0_2 = arith.constant 0 : index
    %1 = vector.load %arg2[%c0_1, %c0_2] : memref<32x128xbf16, #tpu.memory_space<vmem>>, vector<32x128xbf16>
    %cst = arith.constant dense<0.000000e+00> : vector<64x128xf32>
    %2 = tpu.matmul %0, %1, %cst {dimension_numbers = #tpu.dot_dimension_numbers<[1], [0], [0], [1], [0, 0, 1, 1], [], []>} : vector<64x32xbf16>, vector<32x128xbf16>, vector<64x128xf32> -> vector<64x128xf32>
    %c0_3 = arith.constant 0 : index
    %c0_4 = arith.constant 0 : index
    %3 = vector.load %arg3[%c0_3, %c0_4] : memref<1x128xf32, #tpu.memory_space<vmem>>, vector<1x128xf32>
    %4 = vector.broadcast %3 : vector<1x128xf32> to vector<64x128xf32>
    %5 = arith.addf %2, %4 : vector<64x128xf32>
    %6 = math.tanh %5 : vector<64x128xf32>
    %7 = arith.truncf %6 : vector<64x128xf32> to vector<64x128xbf16>
    %c0_5 = arith.constant 0 : index
    %c0_6 = arith.constant 0 : index
    %8 = vector.load %arg4[%c0_5, %c0_6] : memref<128x128xbf16, #tpu.memory_space<vmem>>, vector<128x128xbf16>
    %cst_7 = arith.constant dense<0.000000e+00> : vector<64x128xf32>
    %9 = tpu.matmul %7, %8, %cst_7 {dimension_numbers = #tpu.dot_dimension_numbers<[1], [0], [0], [1], [0, 0, 1, 1], [], []>} : vector<64x128xbf16>, vector<128x128xbf16>, vector<64x128xf32> -> vector<64x128xf32>
    %c0_8 = arith.constant 0 : index
    %c0_9 = arith.constant 0 : index
    %10 = vector.load %arg5[%c0_8, %c0_9] : memref<1x128xf32, #tpu.memory_space<vmem>>, vector<1x128xf32>
    %11 = vector.broadcast %10 : vector<1x128xf32> to vector<64x128xf32>
    %12 = arith.addf %9, %11 : vector<64x128xf32>
    %13 = arith.truncf %12 : vector<64x128xf32> to vector<64x128xbf16>
    %c0_10 = arith.constant 0 : index
    %c0_11 = arith.constant 0 : index
    %14 = vector.load %arg6[%c0_10, %c0_11] : memref<128x128xbf16, #tpu.memory_space<vmem>>, vector<128x128xbf16>
    %cst_12 = arith.constant dense<0.000000e+00> : vector<64x128xf32>
    %15 = tpu.matmul %13, %14, %cst_12 {dimension_numbers = #tpu.dot_dimension_numbers<[1], [0], [0], [1], [0, 0, 1, 1], [], []>} : vector<64x128xbf16>, vector<128x128xbf16>, vector<64x128xf32> -> vector<64x128xf32>
    %c0_13 = arith.constant 0 : index
    %c0_14 = arith.constant 0 : index
    %16 = vector.load %arg7[%c0_13, %c0_14] : memref<1x128xf32, #tpu.memory_space<vmem>>, vector<1x128xf32>
    %17 = vector.broadcast %16 : vector<1x128xf32> to vector<64x128xf32>
    %18 = arith.addf %15, %17 : vector<64x128xf32>
    %c0_15 = arith.constant 0 : index
    %c0_16 = arith.constant 0 : index
    %19 = vector.load %arg8[%c0_15, %c0_16] : memref<64x128xf32, #tpu.memory_space<vmem>>, vector<64x128xf32>
    tpu.vector_store %arg8[%c0_15, %c0_16], %18 {strides = array<i32>} : memref<64x128xf32, #tpu.memory_space<vmem>>, vector<64x128xf32>,
    return
  }
  func.func @transform_0(%arg0: i32) -> (i32, i32) {
    %c0_i32 = arith.constant 0 : i32
    %c0_i32_0 = arith.constant 0 : i32
    return %arg0, %c0_i32 : i32, i32
  }
  func.func @transform_1(%arg0: i32) -> (i32, i32) {
    %c0_i32 = arith.constant 0 : i32
    %c0_i32_0 = arith.constant 0 : i32
    %c0_i32_1 = arith.constant 0 : i32
    return %c0_i32, %c0_i32_0 : i32, i32
  }
  func.func @transform_2(%arg0: i32) -> (i32, i32) {
    %c0_i32 = arith.constant 0 : i32
    %c0_i32_0 = arith.constant 0 : i32
    %c0_i32_1 = arith.constant 0 : i32
    return %c0_i32, %c0_i32_0 : i32, i32
  }
  func.func @transform_3(%arg0: i32) -> (i32, i32) {
    %c0_i32 = arith.constant 0 : i32
    %c0_i32_0 = arith.constant 0 : i32
    %c0_i32_1 = arith.constant 0 : i32
    return %c0_i32, %c0_i32_0 : i32, i32
  }
  func.func @transform_4(%arg0: i32) -> (i32, i32) {
    %c0_i32 = arith.constant 0 : i32
    %c0_i32_0 = arith.constant 0 : i32
    %c0_i32_1 = arith.constant 0 : i32
    return %c0_i32, %c0_i32_0 : i32, i32
  }
  func.func @transform_5(%arg0: i32) -> (i32, i32) {
    %c0_i32 = arith.constant 0 : i32
    %c0_i32_0 = arith.constant 0 : i32
    %c0_i32_1 = arith.constant 0 : i32
    return %c0_i32, %c0_i32_0 : i32, i32
  }
  func.func @transform_6(%arg0: i32) -> (i32, i32) {
    %c0_i32 = arith.constant 0 : i32
    %c0_i32_0 = arith.constant 0 : i32
    %c0_i32_1 = arith.constant 0 : i32
    return %c0_i32, %c0_i32_0 : i32, i32
  }
  func.func @transform_7(%arg0: i32) -> (i32, i32) {
    %c0_i32 = arith.constant 0 : i32
    %c0_i32_0 = arith.constant 0 : i32
    return %arg0, %c0_i32 : i32, i32
  }
}

</mosaic_0001>

<bundles_post_ra>
// kernel: tpu_custom_call.1
= control target key start
LH: loop header
LB: loop body
LE: loop exit
PB: predicated region body
PF: predicated region fallthrough
CT: control target
= control target key end

     0   :  { %12 = vsyncpa [#allocation3], 0  ;;  %s1131_s0 = inlined_call_operand.vmem [shape: bf16[256,32], index: 0, kind: input, shape index: {}]   ;;  %s1132_s1 = inlined_call_operand.vmem [shape: bf16[32,128], index: 1, kind: input, shape index: {}]   ;;  %s1133_s2 = inlined_call_operand.vmem [shape: f32[1,128], index: 2, kind: input, shape index: {}]   ;;  %s1134_s3 = inlined_call_operand.vmem [shape: bf16[128,128], index: 3, kind: input, shape index: {}]   ;;  %s1135_s4 = inlined_call_operand.vmem [shape: f32[1,128], index: 4, kind: input, shape index: {}]   ;;  %s1136_s5 = inlined_call_operand.vmem [shape: bf16[128,128], index: 5, kind: input, shape index: {}]   ;;  %s1137_s6 = inlined_call_operand.vmem [shape: f32[1,128], index: 6, kind: input, shape index: {}]   ;;  %s1138_s7 = inlined_call_operand.hbm [shape: f32[256,128], index: 7, kind: output, shape index: {}]  }
   0x1   :  { %14 = vsyncpa [#allocation3 + $0x1], 0  ;;  %s976_s24 = smov 0   ;;  %s978_s25 = smov 0  }
   0x2   :  { %s980_s26 = smov 0   ;;  %s982_s27 = smov 0  }
   0x3 LB: > { %s997_s28 = sadd.s32 4294967295, %s932_s27   ;;  %s667_s29 = sadd.s32 4294967294, %s932_s27   ;;  %s932_s27 = sphi %s982_s27, %s1144_s27   ;;  %s928_s26 = sphi %s980_s26, %s1143_s26   ;;  %s924_s25 = sphi %s978_s25, %s1142_s25   ;;  %s920_s24 = sphi %s976_s24, %s1141_s24  }
   0x4   : > { %s1001_s30 = sadd.s32 1, %s932_s27   ;;  %s179_s8 = sadd.s32 1, %s928_s26 }
   0x5   : > { %s176_s9 = ssub.s32 %s932_s27, %s1001_s30  ;;  %p189_p0 = scmp.ne.s32.totalorder %s928_s26, %s924_s25 }
   0x6   : > { %p177_p1 = scmp.eq.s32.totalorder %s176_s9, 0  ;;  %p190_p2 = scmp.eq.s32.totalorder %s997_s28, 3 }
   0x7   : > { %p195_p3 = scmp.ne.s32.totalorder %s924_s25, %s920_s24  ;;  %p196_p4 = scmp.eq.s32.totalorder %s667_s29, 3 }
   0x8   : > { %s1012_s10 = scalar_select %p177_p1, %s928_s26, %s179_s8  }
   0x9   : > { %p1014_p5 = por %p190_p2, %p189_p0  ;;  %p1018_p6 = por %p196_p4, %p195_p3 }
   0xa   : > { %p670_p7 = scmp.ge.s32.totalorder %s932_s27, 1  ;;  %p241_p8 = scmp.lt.s32.totalorder %s932_s27, 5 }
   0xc   : > { %p242_p9 = pnand %p670_p7, %p241_p8 }
   0xd   : > { %s672_s15 = sshll.u32 (!%p242_p9), %s997_s28, 3  ;;  %s270_s16 = sand.u32 (!%p242_p9), 1, %s924_s25  }
   0xe   : > { %245 = sbr.rel (%p242_p9) target bundleno = 510 (0x1fe), region = 48  ;;  %p274_p10 = scmp.lt.s32.totalorder (!%p242_p9), %s672_s15, 31 }
   0xf   : > { %s671_s17 = sshll.u32 (!%p242_p9), %s270_s16, 6  ;;  %s590_s13 = scalar_lea.sflag (!%p242_p9), [#allocation3], %s270_s16 }
  0x10   : > { %s272_s20 = scalar_lea.vmem (!%p242_p9), [#allocation2], %s671_s17 }
  0x11   : > { %s602_s8 = sshll.u32 (!%p242_p9), %s272_s20, 4  ;;  %s603_s8 = int_to_ptr.vmem [resolvable:$true] %s602_s8 }
  0x13   : > { %v776_v0 = vld [vmem:[%s1132_s1 + $0x8] sm:$0xff]  ;;  %v775_v1 = vld [vmem:[%s1132_s1] sm:$0xff]  ;;  %s1146_s15 = smov (!%p274_p10, %s672_s15), 31  ;;  %vm329_vm0 = vcmask 261120   ;;  %v784_v4 = vld [vmem:[%s1134_s3 + $0x38] sm:$0xff] }
  0x14   : > { %348 = vmatpush.bf16.msra.mxu0 %v776_v0  ;;  %s673_s18 = sshll.u32 %s1146_s15, 2  ;;  %451 = vmatpush.bf16.msra.mxu1 %v784_v4  ;;  %v783_v5 = vld [vmem:[%s1134_s3 + $0x30] sm:$0xff]  ;;  %v782_v6 = vld [vmem:[%s1134_s3 + $0x28] sm:$0xff]  ;;  %v781_v9 = vld [vmem:[%s1134_s3 + $0x20] sm:$0xff] }
  0x15   : > { %s277_s21 = scalar_lea.vmem %s1131_s0, %s673_s18  ;;  %794 = vmatpush.bf16.msra.mxu3 %v784_v4  ;;  %v780_v10 = vld [vmem:[%s1134_s3 + $0x18] sm:$0xff]  ;;  %v779_v11 = vld [vmem:[%s1134_s3 + $0x10] sm:$0xff]  ;;  %v778_v12 = vld [vmem:[%s1134_s3 + $0x8] sm:$0xff]  ;;  %s890_s18 = scalar_lea.hbm %s1138_s7, 256 }
  0x16   : > { %v771_v2 = vld [vmem:[%s277_s21] sm:$0xff]  ;;  %v772_v3 = vld [vmem:[%s277_s21 + $0x8] sm:$0xff]  ;;  %v773_v7 = vld [vmem:[%s277_s21 + $0x10] sm:$0xff] }
  0x17   : > { %v774_v8 = vld [vmem:[%s277_s21 + $0x18] sm:$0xff]  ;;  %v777_v13 = vld [vmem:[%s1134_s3] sm:$0xff]  ;;  %v791_v32 = vld [vmem:[%s1136_s5 + $0x30] sm:$0xff]  ;;  %s793_s21 = sshll.u32 %s997_s28, 6 }
  0x18   : > { %349 = vmatpush.bf16.msra.mxu0 %v775_v1  ;;  %452 = vmatpush.bf16.msra.mxu1 %v783_v5  ;;  %v851_v15 = vld [vmem:[%s1133_s2] ss:$0 sm:$0xff]  ;;  %v792_v30 = vld [vmem:[%s1136_s5 + $0x38] sm:$0xff]  ;;  %v790_v35 = vld [vmem:[%s1136_s5 + $0x28] sm:$0xff]  ;;  %s601_s29 = scalar_lea.hbm %s1138_s7, %s793_s21 }
  0x19   : > { %795 = vmatpush.bf16.msra.mxu3 %v783_v5  ;;  %802 = vmatpush.bf16.msra.mxu2 %v792_v30  ;;  %v789_v36 = vld [vmem:[%s1136_s5 + $0x20] sm:$0xff]  ;;  %v788_v41 = vld [vmem:[%s1136_s5 + $0x18] sm:$0xff]  ;;  %v787_v48 = vld [vmem:[%s1136_s5 + $0x10] sm:$0xff]  ;;  %s604_s9 = sshll.u32 %s601_s29, 4  ;;  %s605_s9 = int_to_ptr.hbm [resolvable:$true] %s604_s9 }
  0x1a   : > { %v786_v49 = vld [vmem:[%s1136_s5 + $0x8] sm:$0xff]  ;;  %v785_v50 = vld [vmem:[%s1136_s5] sm:$0xff]  ;;  %s884_s14 = sshra.s32 %s605_s9, 4  ;;  %s885_s14 = int_to_ptr.hbm [resolvable:$true] %s884_s14 }
  0x1b   : > { %698 = vmatmul.msk.bf16.vlgmr.msra.gmra.mxu0 %vm329_vm0, %v771_v2  ;;  %v852_v52 = vld [vmem:[%s1135_s4] ss:$0 sm:$0xff]  ;;  %s886_s28 = scalar_lea.hbm %s885_s14, 64  ;;  %p891_p0 = scmp.lt.s32.totalorder %s885_s14, %s1138_s7 }
  0x1c   : > { %453 = vmatpush.bf16.msra.mxu1 %v782_v6  ;;  %p887_p11 = scmp.ne.s32.totalorder %s885_s14, %s886_s28  ;;  %p892_p1 = scmp.lt.s32.totalorder %s890_s18, %s886_s28 }
  0x1d   : > { %796 = vmatpush.bf16.msra.mxu3 %v782_v6  ;;  %803 = vmatpush.bf16.msra.mxu2 %v791_v32 }
  0x1e   : > { %p888_p12 = pnand %p887_p11, %p1014_p5  ;;  %p893_p2 = por %p892_p1, %p891_p0 }
  0x20   : > { %454 = vmatpush.bf16.msra.mxu1 %v781_v9  ;;  %p889_p13 = pneg %p888_p12 }
  0x21   : > { %797 = vmatpush.bf16.msra.mxu3 %v781_v9  ;;  %804 = vmatpush.bf16.msra.mxu2 %v790_v35 }
  0x22   : > { %p894_p3 = pnand %p893_p2, %p889_p13 }
  0x24   : > { %455 = vmatpush.bf16.msra.mxu1 %v780_v10 }
  0x25   : > { %798 = vmatpush.bf16.msra.mxu3 %v780_v10  ;;  %805 = vmatpush.bf16.msra.mxu2 %v789_v36 }
  0x28   : > { %456 = vmatpush.bf16.msra.mxu1 %v779_v11 }
  0x29   : > { %799 = vmatpush.bf16.msra.mxu3 %v779_v11  ;;  %806 = vmatpush.bf16.msra.mxu2 %v788_v41 }
  0x2b   : > { %699 = vmatmul.msk.bf16.gmra.mxu0 %vm329_vm0, %v772_v3 }
  0x2c   : > { %457 = vmatpush.bf16.msra.mxu1 %v778_v12 }
  0x2d   : > { %800 = vmatpush.bf16.msra.mxu3 %v778_v12  ;;  %807 = vmatpush.bf16.msra.mxu2 %v787_v48 }
  0x30   : > { %458 = vmatpush.bf16.msra.mxu1 %v777_v13 }
  0x31   : > { %801 = vmatpush.bf16.msra.mxu3 %v777_v13  ;;  %808 = vmatpush.bf16.msra.mxu2 %v786_v49 }
  0x34   : > { %552 = vmatpush.bf16.msrb.mxu1 %v792_v30 }
  0x35   : > { %809 = vmatpush.bf16.msra.mxu2 %v785_v50 }
  0x38   : > { %553 = vmatpush.bf16.msrb.mxu1 %v791_v32 }
  0x3b   : > { %700 = vmatmul.msk.bf16.gmra.mxu0 %vm329_vm0, %v773_v7 }
  0x3c   : > { %554 = vmatpush.bf16.msrb.mxu1 %v790_v35 }
  0x40   : > { %555 = vmatpush.bf16.msrb.mxu1 %v789_v36 }
  0x44   : > { %556 = vmatpush.bf16.msrb.mxu1 %v788_v41 }
  0x48   : > { %557 = vmatpush.bf16.msrb.mxu1 %v787_v48 }
  0x4b   : > { %701 = vmatmul.msk.bf16.gmra.mxu0 %vm329_vm0, %v774_v8  ;;  %v853_v8 = vld [vmem:[%s1137_s6] ss:$0 sm:$0xff] }
  0x4c   : > { %558 = vmatpush.bf16.msrb.mxu1 %v786_v49 }
  0x50   : > { %559 = vmatpush.bf16.msrb.mxu1 %v785_v50 }
  0x98   : > { %v351_v14 = vpop.f32.mrf.mxu0 }
  0x99   : > { %v352_v16 = vadd.f32 %v851_v15, %v351_v14 }
  0x9b   : > { %854 = vtanh.f32 %v352_v16 }
  0xa0   : > { %v353_v17 = vpop.f32.mrf.mxu0 }
  0xa1   : > { %v354_v18 = vadd.f32 %v851_v15, %v353_v17  ;;  %v855_v19 = vpop.eup %854 }
  0xa3   : > { %856 = vtanh.f32 %v354_v18 }
  0xa8   : > { %v356_v20 = vpop.f32.mrf.mxu0 }
  0xa9   : > { %v857_v21 = vpop.eup %856  ;;  %v357_v23 = vadd.f32 %v851_v15, %v356_v20 }
  0xaa   : > { %v379_v22 = vpack.c.bf16 %v857_v21, %v855_v19 }
  0xab   : > { %858 = vtanh.f32 %v357_v23 }
  0xac   : > { %459 = vmatmul.bf16.vlgmr.msra.gmra.mxu1 %v379_v22 }
  0xb0   : > { %v358_v24 = vpop.f32.mrf.mxu0 }
  0xb1   : > { %v359_v25 = vadd.f32 %v851_v15, %v358_v24  ;;  %v859_v26 = vpop.eup %858 }
  0xb3   : > { %860 = vtanh.f32 %v359_v25 }
  0xb8   : > { %v361_v27 = vpop.f32.mrf.mxu0 }
  0xb9   : > { %v861_v28 = vpop.eup %860  ;;  %v362_v31 = vadd.f32 %v851_v15, %v361_v27 }
  0xba   : > { %v380_v29 = vpack.c.bf16 %v861_v28, %v859_v26 }
  0xbb   : > { %862 = vtanh.f32 %v362_v31 }
  0xbc   : > { %464 = vmatmul.bf16.vlgmr.msra.gmra.mxu3 %v380_v29 }
  0xc0   : > { %v363_v33 = vpop.f32.mrf.mxu0 }
  0xc1   : > { %v364_v34 = vadd.f32 %v851_v15, %v363_v33  ;;  %v863_v37 = vpop.eup %862 }
  0xc3   : > { %864 = vtanh.f32 %v364_v34 }
  0xc8   : > { %v366_v38 = vpop.f32.mrf.mxu0 }
  0xc9   : > { %v865_v39 = vpop.eup %864  ;;  %v367_v42 = vadd.f32 %v851_v15, %v366_v38 }
  0xca   : > { %v381_v40 = vpack.c.bf16 %v865_v39, %v863_v37 }
  0xcb   : > { %866 = vtanh.f32 %v367_v42 }
  0xcc   : > { %469 = vmatmul.bf16.gmra.mxu3 %v381_v40 }
  0xd0   : > { %v368_v43 = vpop.f32.mrf.mxu0 }
  0xd1   : > { %v369_v44 = vadd.f32 %v851_v15, %v368_v43  ;;  %v867_v45 = vpop.eup %866 }
  0xd3   : > { %868 = vtanh.f32 %v369_v44 }
  0xd9   : > { %v869_v46 = vpop.eup %868 }
  0xda   : > { %v382_v47 = vpack.c.bf16 %v869_v46, %v867_v45 }
  0xdc   : > { %474 = vmatmul.bf16.gmra.mxu3 %v382_v47 }
 0x129   : > { %v460_v51 = vpop.f32.mrf.mxu1 }
 0x12a   : > { %v461_v54 = vadd.f32 %v852_v52, %v460_v51 }
 0x131   : > { %v462_v53 = vpop.f32.mrf.mxu1 }
 0x132   : > { %v463_v55 = vadd.f32 %v852_v52, %v462_v53 }
 0x134   : > { %v480_v56 = vpack.c.bf16 %v463_v55, %v461_v54 }
 0x136   : > { %560 = vmatmul.bf16.vlgmr.msrb.gmra.mxu1 %v480_v56 }
 0x13f   : > { %v465_v57 = vpop.f32.mrf.mxu3 }
 0x140   : > { %v466_v59 = vadd.f32 %v852_v52, %v465_v57 }
 0x147   : > { %v467_v58 = vpop.f32.mrf.mxu3 }
 0x148   : > { %v468_v60 = vadd.f32 %v852_v52, %v467_v58 }
 0x14a   : > { %v481_v61 = vpack.c.bf16 %v468_v60, %v466_v59 }
 0x14c   : > { %565 = vmatmul.bf16.vlgmr.msra.gmra.mxu2 %v481_v61 }
 0x14f   : > { %v470_v62 = vpop.f32.mrf.mxu3 }
 0x150   : > { %v471_v0 = vadd.f32 %v852_v52, %v470_v62 }
 0x157   : > { %v472_v63 = vpop.f32.mrf.mxu3 }
 0x158   : > { %v473_v1 = vadd.f32 %v852_v52, %v472_v63 }
 0x15a   : > { %v482_v2 = vpack.c.bf16 %v473_v1, %v471_v0 }
 0x15c   : > { %570 = vmatmul.bf16.gmra.mxu2 %v482_v2 }
 0x15f   : > { %v475_v3 = vpop.f32.mrf.mxu3 }
 0x160   : > { %v476_v5 = vadd.f32 %v852_v52, %v475_v3 }
 0x167   : > { %v477_v4 = vpop.f32.mrf.mxu3 }
 0x168   : > { %v478_v6 = vadd.f32 %v852_v52, %v477_v4 }
 0x16a   : > { %v483_v7 = vpack.c.bf16 %v478_v6, %v476_v5 }
 0x16c   : > { %575 = vmatmul.bf16.gmra.mxu2 %v483_v7 }
 0x1b3   : > { %v561_v9 = vpop.f32.mrf.mxu1 }
 0x1b4   : > { %v562_v10 = vadd.f32 %v853_v8, %v561_v9 }
 0x1b6   : > { %581 = vst [vmem:[%s272_s20] sm:$0xff] %v562_v10 }
 0x1bb   : > { %v563_v11 = vpop.f32.mrf.mxu1 }
 0x1bc   : > { %v564_v12 = vadd.f32 %v853_v8, %v563_v11 }
 0x1be   : > { %582 = vst [vmem:[%s272_s20 + $0x8] sm:$0xff] %v564_v12 }
 0x1cf   : > { %v566_v13 = vpop.f32.mrf.mxu2 }
 0x1d0   : > { %v567_v14 = vadd.f32 %v853_v8, %v566_v13 }
 0x1d2   : > { %583 = vst [vmem:[%s272_s20 + $0x10] sm:$0xff] %v567_v14 }
 0x1d7   : > { %v568_v15 = vpop.f32.mrf.mxu2 }
 0x1d8   : > { %v569_v16 = vadd.f32 %v853_v8, %v568_v15 }
 0x1da   : > { %584 = vst [vmem:[%s272_s20 + $0x18] sm:$0xff] %v569_v16 }
 0x1df   : > { %v571_v17 = vpop.f32.mrf.mxu2 }
 0x1e0   : > { %v572_v18 = vadd.f32 %v853_v8, %v571_v17 }
 0x1e2   : > { %585 = vst [vmem:[%s272_s20 + $0x20] sm:$0xff] %v572_v18 }
 0x1e7   : > { %v573_v19 = vpop.f32.mrf.mxu2 }
 0x1e8   : > { %v574_v20 = vadd.f32 %v853_v8, %v573_v19 }
 0x1ea   : > { %586 = vst [vmem:[%s272_s20 + $0x28] sm:$0xff] %v574_v20 }
 0x1ef   : > { %v576_v21 = vpop.f32.mrf.mxu2 }
 0x1f0   : > { %v577_v22 = vadd.f32 %v853_v8, %v576_v21 }
 0x1f2   : > { %587 = vst [vmem:[%s272_s20 + $0x30] sm:$0xff] %v577_v22 }
 0x1f7   : > { %v578_v23 = vpop.f32.mrf.mxu2 }
 0x1f8   : > { %v579_v24 = vadd.f32 %v853_v8, %v578_v23 }
 0x1fa   : > { %588 = vst [vmem:[%s272_s20 + $0x38] sm:$0xff] %v579_v24 }
 0x1fb   : > { %897 = shalt.err (!%p894_p3)
}
 0x1fc   : > { %s934_s16 = smov 128   ;;  %s935_s20 = smov 8  }
 0x1fd   : > { %810 = dma.vmem_to_hbm [thread:$0]  (%p1014_p5), %s603_s8, 1024, %s605_s9, %s590_s13, %s934_s16, %s934_s16, %s935_s20  }
 0x1fe PF: > { %p816_p4 = scmp.ge.s32.totalorder %s932_s27, 2  ;;  %s619_s22 = sand.u32 1, %s920_s24  }
 0x1ff   : > { %s620_s23 = scalar_lea.sflag [#allocation3], %s619_s22 }
 0x200   : > { %p813_p7 = pnand %p816_p4, %p1018_p6 }
 0x202   : > { %p814_p8 = pneg %p813_p7 }
 0x204   : > { %915 = dma.done.wait (%p814_p8), %s620_s23, 1024  }
 0x205   : > { %917 = vsyncadd (%p814_p8), %s620_s23, 4294966272  ;;  %p17_p9 = scmp.ge.s32.totalorder %s1001_s30, 6   ;;  %s1141_s24 = smov %s924_s25 }
 0x206   : > { %s1142_s25 = smov %s928_s26  ;;  %s1143_s26 = smov %s1012_s10 }
 0x207   : > { %s1144_s27 = smov %s1001_s30  ;;  %19 = sbr.rel (!%p17_p9) target bundleno = 3 (0x3), region = 83 }
 0x20c   :  { %626 = vsyncpa [#allocation3], 1 }
 0x20d   :  { %628 = vsyncpa [#allocation3 + $0x1], 1 }

</bundles_post_ra>
